<compile_context>
chip_gen: v7x
topology: tpu7x:2x2x1
jax: 0.10.0
libtpu: 0.0.40
codegen_flags: <defaults>
</compile_context>

<pallas_src>
import jax
import jax.numpy as jnp
from jax import lax
from jax.experimental import pallas as pl
from jax.experimental.pallas import tpu as pltpu


def _augment_kernel(bbx_ref, scale_ref, bias_ref, x_ref, o_ref, row_buf):
    """One grid step == one (image b, channel c) plane.

    bbx_ref  : SMEM (B, 4) int32  -- per image [off_i, off_j, h, w]
    scale_ref: SMEM (C,)   f32    -- 1 / std  per channel
    bias_ref : SMEM (C,)   f32    -- -mean/std per channel
    x_ref    : VMEM (1, 1, H, W)  -- un-shifted padded image plane
    o_ref    : VMEM (1, 1, H, W)
    row_buf  : VMEM (H + H//2, W) f32 scratch (row-shift slab)
    """
    b = pl.program_id(0)
    c = pl.program_id(1)
    _, _, H, W = x_ref.shape
    row_pad = row_buf.shape[0] - H          # static = H // 2 >= max(off_i)

    off_i = bbx_ref[b, 0]
    off_j = bbx_ref[b, 1]
    h = bbx_ref[b, 2]
    w = bbx_ref[b, 3]
    scale = scale_ref[c]
    bias = bias_ref[c]

    x = x_ref[0, 0].astype(jnp.float32)     # (H, W); compute in f32, I/O dtype free

    # ---- centralize, row part: place rows at [row_pad, row_pad+H) and read an
    # H-row window starting at (row_pad - off_i).  Rows of the window that fall
    # above the written slab (only output rows < off_i) may contain stale VMEM;
    # they land exclusively in masked positions and are overwritten below.
    row_buf[pl.ds(row_pad, H), :] = x
    xr = row_buf[pl.ds(row_pad - off_i, H), :]            # xr[r] = x[r - off_i]

    # ---- centralize, column part: one-hot permutation matmul on the MXU.
    # perm[l, q] = 1 iff l == q - off_j, so (xr @ perm)[r, q] = xr[r, q - off_j]
    # (and 0 when q - off_j is out of range -> masked region anyway).
    l_idx = lax.broadcasted_iota(jnp.int32, (W, W), 0)
    q_idx = lax.broadcasted_iota(jnp.int32, (W, W), 1)
    perm = (l_idx == (q_idx - off_j)).astype(jnp.float32)  # (W, W)
    xs = jnp.dot(xr, perm, preferred_element_type=jnp.float32)  # (H, W)

    # ---- _msk + _normalize_image, mask built from 1-D row/col iotas ---------
    rows = lax.broadcasted_iota(jnp.int32, (H, 1), 0)
    cols = lax.broadcasted_iota(jnp.int32, (1, W), 1)
    valid = ((rows >= off_i) & (rows < off_i + h)
             & (cols >= off_j) & (cols < off_j + w))       # (H, W) via broadcast
    out = jnp.where(valid, xs * scale + bias, bias)        # padded region == -mean/std

    o_ref[0, 0] = out.astype(o_ref.dtype)


def random_augmentation_forward(x, valid_size, rgb_mean, rgb_std):
    """x:          (B, C, H, W) padded batch (result of pad_packed_images),
                   any float dtype (bf16 input/output supported -- compute is f32).
    valid_size:    (B, 2) int per-image [h, w] of the valid top-left region.
    rgb_mean/std:  (C,) dataset statistics.
    Returns the centralized, masked, normalized batch (B, C, H, W)."""
    B, C, H, W = x.shape
    valid_size = valid_size.astype(jnp.int32)
    h = valid_size[:, 0]
    w = valid_size[:, 1]
    off_i = (H - h) // 2
    off_j = (W - w) // 2
    bbx = jnp.stack([off_i, off_j, h, w], axis=1).astype(jnp.int32)   # (B, 4)

    mean = jnp.asarray(rgb_mean, jnp.float32).reshape(C)
    std = jnp.asarray(rgb_std, jnp.float32).reshape(C)
    scale = 1.0 / std                       # per-channel mul instead of divide
    bias = -mean / std

    out_dtype = x.dtype if jnp.issubdtype(x.dtype, jnp.floating) else jnp.float32
    row_pad = H // 2

    # Scoped-VMEM sizing: 2x double-buffered in/out blocks + scratch + slack.
    # Only raise the limit when the default (32 MiB) would not be enough.
    need = 4 * (H * W * 4) + (H + row_pad) * W * 4 + (4 << 20)
    vmem_limit = min(int(need), 128 * 1024 * 1024) if need > (32 << 20) else None

    return pl.pallas_call(
        _augment_kernel,
        out_shape=jax.ShapeDtypeStruct((B, C, H, W), out_dtype),
        grid=(B, C),
        in_specs=[
            pl.BlockSpec(memory_space=pltpu.MemorySpace.SMEM),      # bbx
            pl.BlockSpec(memory_space=pltpu.MemorySpace.SMEM),      # scale
            pl.BlockSpec(memory_space=pltpu.MemorySpace.SMEM),      # bias
            pl.BlockSpec((1, 1, H, W), lambda b, c: (b, c, 0, 0)),  # x
        ],
        out_specs=pl.BlockSpec((1, 1, H, W), lambda b, c: (b, c, 0, 0)),
        scratch_shapes=[pltpu.VMEM((H + row_pad, W), jnp.float32)],
        compiler_params=pltpu.CompilerParams(
            dimension_semantics=("parallel", "parallel"),
            vmem_limit_bytes=vmem_limit,
        ),
    )(bbx, scale, bias, x)


def _reference(x, valid_size, rgb_mean, rgb_std):
    """Pure-JAX reference of the deterministic forward path (roll + mask + norm)."""
    B, C, H, W = x.shape
    h = valid_size[:, 0]
    w = valid_size[:, 1]
    off_i = (H - h) // 2
    off_j = (W - w) // 2
    xc = jax.vmap(
        lambda img, si, sj: jnp.roll(img, shift=(si, sj), axis=(1, 2))
    )(x.astype(jnp.float32), off_i, off_j)
    rows = jnp.arange(H).reshape(1, 1, H, 1)
    cols = jnp.arange(W).reshape(1, 1, 1, W)
    oi = off_i.reshape(B, 1, 1, 1)
    oj = off_j.reshape(B, 1, 1, 1)
    hh = h.reshape(B, 1, 1, 1)
    ww = w.reshape(B, 1, 1, 1)
    valid = (rows >= oi) & (rows < oi + hh) & (cols >= oj) & (cols < oj + ww)
    xm = jnp.where(valid, xc, 0.0)
    mean = jnp.asarray(rgb_mean, jnp.float32).reshape(1, C, 1, 1)
    std = jnp.asarray(rgb_std, jnp.float32).reshape(1, C, 1, 1)
    return (xm - mean) / std


if __name__ == "__main__":
    # Small, lane-dense demo shape (W multiple of 128 -> unmasked stores).
    B, C, H, W = 2, 3, 16, 128
    key = jax.random.PRNGKey(0)
    x = jax.random.uniform(key, (B, C, H, W), dtype=jnp.float32)

    # Per-image valid sizes [h, w]: one image with odd offsets, one full-size.
    valid_size = jnp.array([[11, 93], [16, 128]], dtype=jnp.int32)

    rgb_mean = jnp.array([0.485, 0.456, 0.406], dtype=jnp.float32)
    rgb_std = jnp.array([0.229, 0.224, 0.225], dtype=jnp.float32)

    out = random_augmentation_forward(x, valid_size, rgb_mean, rgb_std)
    out = jax.block_until_ready(out)

    ref = _reference(x, valid_size, rgb_mean, rgb_std)
    assert out.shape == (B, C, H, W)
    assert out.dtype == x.dtype
    # Loose-ish tolerance only to stay robust to MXU f32-matmul precision mode;
    # any placement / mask / scale error produces O(1) differences.
    assert bool(jnp.allclose(out, ref, atol=3e-2, rtol=3e-2))
    print("KERNEL_OK")
</pallas_src>

<mosaic_0001>
module attributes {stable_mosaic.version = 11 : i64} {
  func.func @_augment_kernel(%arg0: i32, %arg1: i32, %arg2: memref<2x4xi32, #tpu.memory_space<smem>>, %arg3: memref<3xf32, #tpu.memory_space<smem>>, %arg4: memref<3xf32, #tpu.memory_space<smem>>, %arg5: memref<1x1x16x128xf32, #tpu.memory_space<vmem>>, %arg6: memref<1x1x16x128xf32, #tpu.memory_space<vmem>>, %arg7: memref<24x128xf32, #tpu.memory_space<vmem>>) attributes {dimension_semantics = [#tpu.dimension_semantics<parallel>, #tpu.dimension_semantics<parallel>], iteration_bounds = array<i64: 2, 3>, scalar_prefetch = 0 : i64, scratch_operands = 1 : i64, tpu.core_type = #tpu.core_type<tc>, window_params = [{transform_indices = @transform_0, window_bounds = array<i64: 2, 4>}, {transform_indices = @transform_1, window_bounds = array<i64: 3>}, {transform_indices = @transform_2, window_bounds = array<i64: 3>}, {transform_indices = @transform_3, window_bounds = array<i64: 1, 1, 16, 128>}, {transform_indices = @transform_4, window_bounds = array<i64: 1, 1, 16, 128>}]} {
    %0 = arith.index_cast %arg0 : i32 to index
    %c0 = arith.constant 0 : index
    %1 = memref.load %arg2[%0, %c0] : memref<2x4xi32, #tpu.memory_space<smem>>
    %2 = arith.index_cast %arg0 : i32 to index
    %c1 = arith.constant 1 : index
    %3 = memref.load %arg2[%2, %c1] : memref<2x4xi32, #tpu.memory_space<smem>>
    %4 = arith.index_cast %arg0 : i32 to index
    %c2 = arith.constant 2 : index
    %5 = memref.load %arg2[%4, %c2] : memref<2x4xi32, #tpu.memory_space<smem>>
    %6 = arith.index_cast %arg0 : i32 to index
    %c3 = arith.constant 3 : index
    %7 = memref.load %arg2[%6, %c3] : memref<2x4xi32, #tpu.memory_space<smem>>
    %8 = arith.index_cast %arg1 : i32 to index
    %9 = memref.load %arg3[%8] : memref<3xf32, #tpu.memory_space<smem>>
    %10 = arith.index_cast %arg1 : i32 to index
    %11 = memref.load %arg4[%10] : memref<3xf32, #tpu.memory_space<smem>>
    %c0_0 = arith.constant 0 : index
    %c0_1 = arith.constant 0 : index
    %c0_2 = arith.constant 0 : index
    %c0_3 = arith.constant 0 : index
    %12 = vector.load %arg5[%c0_0, %c0_1, %c0_2, %c0_3] : memref<1x1x16x128xf32, #tpu.memory_space<vmem>>, vector<1x1x16x128xf32>
    %13 = vector.shape_cast %12 : vector<1x1x16x128xf32> to vector<16x128xf32>
    %c8 = arith.constant 8 : index
    %c0_4 = arith.constant 0 : index
    %14 = vector.load %arg7[%c8, %c0_4] : memref<24x128xf32, #tpu.memory_space<vmem>>, vector<16x128xf32>
    tpu.vector_store %arg7[%c8, %c0_4], %13 {strides = array<i32>} : memref<24x128xf32, #tpu.memory_space<vmem>>, vector<16x128xf32>,
    %c8_i32 = arith.constant 8 : i32
    %15 = arith.subi %c8_i32, %1 : i32
    %16 = arith.index_cast %15 : i32 to index
    %c0_5 = arith.constant 0 : index
    %17 = vector.load %arg7[%16, %c0_5] : memref<24x128xf32, #tpu.memory_space<vmem>>, vector<16x128xf32>
    %18 = tpu.iota {dimensions = array<i32: 0>} : vector<128x128xi32>
    %19 = tpu.iota {dimensions = array<i32: 1>} : vector<128x128xi32>
    %20 = vector.broadcast %3 : i32 to vector<128x128xi32>
    %21 = arith.subi %19, %20 : vector<128x128xi32>
    %22 = arith.cmpi eq, %18, %21 : vector<128x128xi32>
    %23 = arith.extui %22 : vector<128x128xi1> to vector<128x128xi32>
    %24 = arith.sitofp %23 : vector<128x128xi32> to vector<128x128xf32>
    %cst = arith.constant dense<0.000000e+00> : vector<16x128xf32>
    %25 = tpu.matmul %17, %24, %cst {dimension_numbers = #tpu.dot_dimension_numbers<[1], [0], [0], [1], [0, 0, 1, 1], [], []>} : vector<16x128xf32>, vector<128x128xf32>, vector<16x128xf32> -> vector<16x128xf32>
    %26 = tpu.iota {dimensions = array<i32: 0>} : vector<16x1xi32>
    %27 = tpu.iota {dimensions = array<i32: 1>} : vector<1x128xi32>
    %28 = vector.broadcast %1 : i32 to vector<16x1xi32>
    %29 = arith.cmpi sge, %26, %28 : vector<16x1xi32>
    %30 = arith.addi %1, %5 : i32
    %31 = vector.broadcast %30 : i32 to vector<16x1xi32>
    %32 = arith.cmpi slt, %26, %31 : vector<16x1xi32>
    %33 = arith.andi %29, %32 : vector<16x1xi1>
    %34 = vector.broadcast %3 : i32 to vector<1x128xi32>
    %35 = arith.cmpi sge, %27, %34 : vector<1x128xi32>
    %36 = vector.broadcast %33 : vector<16x1xi1> to vector<16x128xi1>
    %37 = vector.broadcast %35 : vector<1x128xi1> to vector<16x128xi1>
    %38 = arith.andi %36, %37 : vector<16x128xi1>
    %39 = arith.addi %3, %7 : i32
    %40 = vector.broadcast %39 : i32 to vector<1x128xi32>
    %41 = arith.cmpi slt, %27, %40 : vector<1x128xi32>
    %42 = vector.broadcast %41 : vector<1x128xi1> to vector<16x128xi1>
    %43 = arith.andi %38, %42 : vector<16x128xi1>
    %44 = vector.broadcast %9 : f32 to vector<16x128xf32>
    %45 = arith.mulf %25, %44 : vector<16x128xf32>
    %46 = vector.broadcast %11 : f32 to vector<16x128xf32>
    %47 = arith.addf %45, %46 : vector<16x128xf32>
    %48 = vector.broadcast %11 : f32 to vector<16x128xf32>
    %49 = arith.select %43, %47, %48 : vector<16x128xi1>, vector<16x128xf32>
    %c0_6 = arith.constant 0 : index
    %c0_7 = arith.constant 0 : index
    %c0_8 = arith.constant 0 : index
    %c0_9 = arith.constant 0 : index
    %50 = vector.load %arg6[%c0_6, %c0_7, %c0_8, %c0_9] : memref<1x1x16x128xf32, #tpu.memory_space<vmem>>, vector<1x1x16x128xf32>
    %51 = vector.shape_cast %50 : vector<1x1x16x128xf32> to vector<16x128xf32>
    %52 = vector.shape_cast %49 : vector<16x128xf32> to vector<1x1x16x128xf32>
    tpu.vector_store %arg6[%c0_6, %c0_7, %c0_8, %c0_9], %52 {strides = array<i32>} : memref<1x1x16x128xf32, #tpu.memory_space<vmem>>, vector<1x1x16x128xf32>,
    return
  }
  func.func @transform_0(%arg0: i32, %arg1: i32) -> (i32, i32) {
    %c0_i32 = arith.constant 0 : i32
    %c0_i32_0 = arith.constant 0 : i32
    %c0_i32_1 = arith.constant 0 : i32
    return %c0_i32, %c0_i32_0 : i32, i32
  }
  func.func @transform_1(%arg0: i32, %arg1: i32) -> i32 {
    %c0_i32 = arith.constant 0 : i32
    %c0_i32_0 = arith.constant 0 : i32
    return %c0_i32 : i32
  }
  func.func @transform_2(%arg0: i32, %arg1: i32) -> i32 {
    %c0_i32 = arith.constant 0 : i32
    %c0_i32_0 = arith.constant 0 : i32
    return %c0_i32 : i32
  }
  func.func @transform_3(%arg0: i32, %arg1: i32) -> (i32, i32, i32, i32) {
    %c0_i32 = arith.constant 0 : i32
    %c0_i32_0 = arith.constant 0 : i32
    %c0_i32_1 = arith.constant 0 : i32
    return %arg0, %arg1, %c0_i32, %c0_i32_0 : i32, i32, i32, i32
  }
  func.func @transform_4(%arg0: i32, %arg1: i32) -> (i32, i32, i32, i32) {
    %c0_i32 = arith.constant 0 : i32
    %c0_i32_0 = arith.constant 0 : i32
    %c0_i32_1 = arith.constant 0 : i32
    return %arg0, %arg1, %c0_i32, %c0_i32_0 : i32, i32, i32, i32
  }
}

</mosaic_0001>

<bundles_post_ra>
// kernel: tpu_custom_call.1
= control target key start
LH: loop header
LB: loop body
LE: loop exit
PB: predicated region body
PF: predicated region fallthrough
CT: control target
= control target key end

     0   :  { %s1451_s0 = inlined_call_operand.hbm [shape: s32[2,4], index: 0, kind: input, shape index: {}]   ;;  %s1452_s1 = inlined_call_operand.vmem [shape: f32[3], index: 1, kind: input, shape index: {}]   ;;  %s1453_s2 = inlined_call_operand.vmem [shape: f32[3], index: 2, kind: input, shape index: {}]   ;;  %s1454_s3 = inlined_call_operand.hbm [shape: f32[2,3,16,128], index: 3, kind: input, shape index: {}]   ;;  %s1455_s4 = inlined_call_operand.hbm [shape: f32[2,3,16,128], index: 4, kind: output, shape index: {}]  }
   0x1   :  { %1463 = sst [smem:[#allocation21_spill]] %s1451_s0 }
   0x2   :  { %1464 = sst [smem:[#allocation22_spill]] %s1452_s1 }
   0x3   :  { %1465 = sst [smem:[#allocation23_spill]] %s1453_s2 }
   0x4   :  { %9 = vsyncpa [#allocation6], 0 }
   0x5   :  { %10 = vsyncpa [#allocation7], 0 }
   0x6   :  { %11 = vsyncpa [#allocation10], 0 }
   0x7   :  { %12 = vsyncpa [#allocation4], 0 }
   0x8   :  { %14 = vsyncpa [#allocation4 + $0x1], 0 }
   0x9   :  { %15 = vsyncpa [#allocation5], 0 }
   0xa   :  { %17 = vsyncpa [#allocation5 + $0x1], 0  ;;  %s1085_s15 = smov 0   ;;  %s1087_s16 = smov 0  }
   0xb   :  { %s1089_s17 = smov 0   ;;  %s1091_s18 = smov 0  }
   0xc   :  { %s1093_s19 = smov 0   ;;  %s1095_s20 = smov 0  }
   0xd   :  { %s1097_s21 = smov 0   ;;  %s1099_s22 = smov 0  }
   0xe LB: > { %1466 = sst [smem:[#allocation18_spill]] %s1040_s20  ;;  %s610_s23 = sadd.s32 4294967295, %s1048_s22   ;;  %s1048_s22 = sphi %s1099_s22, %s23_s22   ;;  %s1044_s21 = sphi %s1097_s21, %s1498_s21   ;;  %s1040_s20 = sphi %s1095_s20, %s1492_s20   ;;  %s1036_s19 = sphi %s1093_s19, %s1497_s19   ;;  %s1032_s18 = sphi %s1091_s18, %s1491_s18   ;;  %s1028_s17 = sphi %s1089_s17, %s1496_s17   ;;  %s1024_s16 = sphi %s1087_s16, %s1495_s16   ;;  %s1020_s15 = sphi %s1085_s15, %s1494_s15  }
   0xf   : > { %s611_s24 = sadd.s32 4294967294, %s1048_s22   ;;  %p120_p0 = scmp.ne.s32.totalorder %s1024_s16, %s1020_s15 }
  0x10   : > { %p1129_p1 = scmp.eq.s32.totalorder %s610_s23, 0  ;;  %p1133_p2 = scmp.eq.s32.totalorder %s610_s23, 5 }
  0x11   : > { %p152_p3 = scmp.eq.s32.totalorder %s611_s24, 5  ;;  %p612_p5 = scmp.ge.s32.totalorder %s1048_s22, 1 }
  0x12   : > { %s1467_s25 = scalar_select %p1129_p1, 1, 0 }
  0x13   : > { %p1139_p4 = por %p1129_p1, %p120_p0  ;;  %p1144_p6 = por %p152_p3, %p120_p0 }
  0x14   : > { %p159_p7 = scmp.lt.s32.totalorder %s1048_s22, 7  ;;  %s1472_s1 = sld [smem:[#allocation22_spill]] }
  0x15   : > { %s1469_s27 = scalar_select %p1139_p4, 1, 0 }
  0x16   : > { %s1470_s28 = scalar_select %p1144_p6, 1, 0 }
  0x17   : > { %p1149_p8 = pnand %p612_p5, %p159_p7  ;;  %s1473_s2 = sld [smem:[#allocation23_spill]] }
  0x18   : > { %s1475_s0 = sld [smem:[#allocation21_spill]] }
  0x19   : > { %p767_p9 = pneg %p1149_p8 }
  0x1a   : > { %s181_s6 = sshll.u32 %s1472_s1, 4  ;;  %s182_s6 = int_to_ptr.vmem [resolvable:$true] %s181_s6 }
  0x1b   : > { %p1163_p10 = pnand %p767_p9, %p1129_p1 }
  0x1d   : > { %s192_s9 = sshll.u32 %s1473_s2, 4  ;;  %p867_p12 = pneg %p1163_p10  ;;  %s1167_s9 = int_to_ptr.vmem [resolvable:$true] %s192_s9 }
  0x1e   : > { %s865_s13 = scalar_lea.hbm %s1475_s0, 32 }
  0x1f   : > { %p866_p11 = scmp.ne.s32.totalorder %s1475_s0, %s865_s13  ;;  %p872_p3 = scmp.lt.u32.totalorder %s865_s13, %s1475_s0 }
  0x21   : > { %p868_p13 = pnand %p867_p12, %p866_p11 }
  0x23   : > { %p869_p0 = pneg %p868_p13 }
  0x25   : > { %p874_p5 = pnand %p872_p3, %p869_p0 }
  0x27   : > { %877 = shalt.err (!%p874_p5)
}
  0x28   : > { %s1050_s5 = smov [#allocation3]   ;;  %s878_s11 = scalar_lea.vmem %s182_s6, 16 }
  0x29   : > { %770 = dma.hbm_to_smem (!%p1163_p10), %s1475_s0, 32, %s1050_s5, [#allocation6]  }
  0x2a   : > { %p879_p7 = scmp.ne.s32.totalorder %s182_s6, %s878_s11  ;;  %p886_p13 = scmp.lt.s32.totalorder %s182_s6, %s182_s6 }
  0x2b   : > { %p887_p6 = scmp.lt.s32.totalorder %s878_s11, %s878_s11 }
  0x2c   : > { %p881_p9 = pnand %p879_p7, %p867_p12 }
  0x2d   : > { %p888_p4 = por %p887_p6, %p886_p13 }
  0x2e   : > { %p882_p11 = pneg %p881_p9 }
  0x30   : > { %p889_p1 = pnand %p888_p4, %p882_p11 }
  0x32   : > { %892 = shalt.err (!%p889_p1)
}
  0x33   : > { %s1051_s12 = smov [#allocation8]   ;;  %s893_s13 = scalar_lea.vmem %s1167_s9, 16 }
  0x34   : > { %773 = dma.vmem_to_smem (!%p1163_p10), %s182_s6, 16, %s1051_s12, [#allocation7]  }
  0x35   : > { %p894_p0 = scmp.ne.s32.totalorder %s1167_s9, %s893_s13  ;;  %p901_p7 = scmp.lt.s32.totalorder %s1167_s9, %s1167_s9 }
  0x36   : > { %p902_p9 = scmp.lt.s32.totalorder %s893_s13, %s893_s13 }
  0x37   : > { %p896_p3 = pnand %p894_p0, %p867_p12 }
  0x38   : > { %p903_p6 = por %p902_p9, %p901_p7 }
  0x39   : > { %p897_p5 = pneg %p896_p3 }
  0x3b   : > { %p904_p4 = pnand %p903_p6, %p897_p5 }
  0x3d   : > { %907 = shalt.err (!%p904_p4)
}
  0x3e   : > { %s1052_s14 = smov [#allocation9]   ;;  %s32_s6 = sadd.s32 1, %s1040_s20 }
  0x3f   : > { %776 = dma.vmem_to_smem (!%p1163_p10), %s1167_s9, 16, %s1052_s14, [#allocation10]  }
  0x40   : > { %p33_p1 = scmp.ge.s32.totalorder %s32_s6, 3  ;;  %s35_s23 = sadd.s32 1, %s1044_s21 }
  0x41   : > { %s107_s24 = sadd.s32 1, %s1028_s17  ;;  %p114_p12 = scmp.ne.s32.totalorder %s1028_s17, %s1024_s16 }
  0x42   : > { %s1500_s6 = smov (%p33_p1, %s32_s6), 0  ;;  %s1502_s23 = smov (!%p33_p1, %s35_s23), %s1044_s21 }
  0x43   : > { %1476 = sst [smem:[#allocation19_spill]] %s1500_s6  ;;  %s103_s10 = ssub.s32 %s1040_s20, %s1500_s6 }
  0x44   : > { %p115_p11 = scmp.eq.s32.totalorder %s1048_s22, 0  ;;  %p37_p13 = scmp.ge.s32.totalorder %s1502_s23, 2 }
  0x45   : > { %p1216_p0 = por %p1133_p2, %p114_p12  ;;  %p788_p3 = scmp.lt.s32.totalorder %s1048_s22, 6 }
  0x46   : > { %p1220_p10 = por %p115_p11, %p114_p12  ;;  %s1504_s23 = smov (%p37_p13, %s1502_s23), 0 }
  0x47   : > { %s1477_s30 = scalar_select %p1216_p0, 1, 0 }
  0x48   : > { %1479 = sst [smem:[#allocation20_spill]] %s1504_s23  ;;  %s203_s5 = sand.u32 1, %s1028_s17  }
  0x49   : > { %s618_s7 = sshll.u32 %s1040_s20, 1  ;;  %s102_s8 = ssub.s32 %s1044_s21, %s1504_s23 }
  0x4a   : > { %s104_s11 = sor.u32 %s103_s10, %s102_s8  ;;  %s617_s12 = sshll.u32 %s203_s5, 4 }
  0x4b   : > { %p105_p5 = scmp.eq.s32.totalorder %s104_s11, 0  ;;  %s749_s26 = smul.u32 6, %s1044_s21 }
  0x4c   : > { %s207_s13 = scalar_lea.vmem [#allocation11], %s617_s12  ;;  %p1241_p2 = pnand %p788_p3, %p1220_p10 }
  0x4d   : > { %s216_s14 = sshll.u32 %s207_s13, 4  ;;  %s213_s1 = sadd.s32 %s749_s26, %s618_s7  ;;  %s1235_s14 = int_to_ptr.vmem [resolvable:$true] %s216_s14 }
  0x4e   : > { %s1233_s0 = scalar_select %p105_p5, %s1028_s17, %s107_s24  }
  0x4f   : > { %s619_s2 = sshll.u32 %s213_s1, 7  ;;  %s1250_s24 = scalar_lea.sflag [#allocation4], %s203_s5 }
  0x50   : > { %s1248_s10 = scalar_lea.hbm %s1454_s3, %s619_s2  ;;  %p910_p9 = pneg %p1241_p2 }
  0x51   : > { %s908_s1 = scalar_lea.hbm %s1248_s10, 256  ;;  %s913_s23 = scalar_lea.hbm %s1454_s3, 1536 }
  0x52   : > { %p909_p7 = scmp.ne.s32.totalorder %s1248_s10, %s908_s1  ;;  %p914_p1 = scmp.lt.u32.totalorder %s1248_s10, %s1454_s3 }
  0x53   : > { %p915_p12 = scmp.lt.u32.totalorder %s913_s23, %s908_s1  ;;  %p917_p13 = scmp.lt.u32.totalorder %s908_s1, %s1248_s10 }
  0x54   : > { %p911_p6 = pnand %p910_p9, %p909_p7 }
  0x55   : > { %p916_p11 = por %p915_p12, %p914_p1 }
  0x56   : > { %p912_p4 = pneg %p911_p6 }
  0x57   : > { %p918_p10 = por %p917_p13, %p916_p11 }
  0x59   : > { %p919_p3 = pnand %p918_p10, %p912_p4 }
  0x5b   : > { %922 = shalt.err (!%p919_p3)
}
  0x5c   : > { %s923_s5 = scalar_lea.vmem %s1235_s14, 256  ;;  %s1053_s8 = smov [#allocation11]  }
  0x5d   : > { %p924_p5 = scmp.ne.s32.totalorder %s1235_s14, %s923_s5  ;;  %s928_s11 = sshll.u32 %s1053_s8, 4  ;;  %s929_s11 = int_to_ptr.vmem [resolvable:$false] %s928_s11 }
  0x5e   : > { %s930_s12 = scalar_lea.vmem %s929_s11, 512  ;;  %p931_p0 = scmp.lt.s32.totalorder %s1235_s14, %s929_s11 }
  0x5f   : > { %p926_p7 = pnand %p924_p5, %p910_p9  ;;  %p932_p1 = scmp.lt.s32.totalorder %s930_s12, %s923_s5 }
  0x61   : > { %p927_p6 = pneg %p926_p7  ;;  %p933_p12 = por %p932_p1, %p931_p0 }
  0x63   : > { %p934_p11 = pnand %p933_p12, %p927_p6 }
  0x65   : > { %937 = shalt.err (!%p934_p11)
}
  0x66   : > { %s1054_s26 = smov 128   ;;  %s1055_s13 = smov 8  }
  0x67   : > { %780 = dma.hbm_to_vmem [thread:$0]  (!%p1241_p2), %s1248_s10, 256, %s1235_s14, %s1250_s24, %s1054_s26, %s1054_s26, %s1055_s13  }
  0x68   : > { %228 = sbr.rel (%p1149_p8) target bundleno = 400 (0x190), region = 36  ;;  %p1481_p9 = scmp.ne.s32.totalorder (!%p1149_p8), %s1467_s25, 0 }
  0x6f   : > { %999 = dma.done.wait (%p1481_p9), [#allocation6], 32  }
  0x70   : > { %1001 = vsyncadd (%p1481_p9), [#allocation6], 4294967264 }
  0x71   : > { %1003 = dma.done.wait (%p1481_p9), [#allocation7], 16  }
  0x72   : > { %1005 = vsyncadd (%p1481_p9), [#allocation7], 4294967280 }
  0x73   : > { %1007 = dma.done.wait (%p1481_p9), [#allocation10], 16  }
  0x74   : > { %1009 = vsyncadd (%p1481_p9), [#allocation10], 4294967280  ;;  %s1293_s29 = sand.u32 1, %s1024_s16   ;;  %p1482_p8 = scmp.ne.s32.totalorder %s1469_s27, 0 }
  0x75   : > { %s624_s6 = sshll.u32 %s1293_s29, 4  ;;  %s243_s14 = scalar_lea.sflag [#allocation4], %s1293_s29 }
  0x76   : > { %s246_s10 = scalar_lea.vmem [#allocation11], %s624_s6 }
  0x77   : > { %1011 = dma.done.wait (%p1482_p8), %s243_s14, 256  }
  0x78   : > { %1013 = vsyncadd (%p1482_p8), %s243_s14, 4294967040 }
  0x79   : > { %251 = sfence }
  0x7a   : > { %s1304_s25 = sshll.u32 %s1036_s19, 7  ;;  %v290_v0 = vlaneseq  ;;  %v282_v1 = vld [vmem:[%s246_s10] sm:$0xff]  ;;  %v283_v2 = vld [vmem:[%s246_s10 + $0x8] sm:$0xff]  ;;  %v1056_v16 = vmov 1.0|1.0   ;;  %s280_s12 = sld [smem:[#allocation8 + %s1032_s18]] }
  0x7b   : > { %s1307_s24 = sld [smem:[#allocation3 + %s1304_s25]]  ;;  %s274_s1 = sadd.s32 1, %s1304_s25  ;;  %284 = vst [vmem:[#allocation2 + $0x8] sm:$0xff] %v282_v1  ;;  %285 = vst [vmem:[#allocation2 + $0x10] sm:$0xff] %v283_v2 }
  0x7c   : > { %s1310_s27 = sld [smem:[#allocation3 + %s274_s1]]  ;;  %s276_s9 = sadd.s32 2, %s1304_s25  ;;  %v1313_v3 = vshrl.u32 %v290_v0, 7  ;;  %v1315_v4 = vand.u32 127, %v290_v0 }
  0x7d   : > { %s277_s20 = sld [smem:[#allocation3 + %s276_s9]]  ;;  %s278_s5 = sadd.s32 3, %s1304_s25 }
  0x7e   : > { %v1318_v5 = vadd.s32 8, %v1313_v3  ;;  %v293_v7 = vadd.s32 16, %v1313_v3  ;;  %v294_v10 = vadd.s32 24, %v1313_v3  ;;  %v295_v12 = vadd.s32 32, %v1313_v3  ;;  %s279_s8 = sld [smem:[#allocation3 + %s278_s5]]  ;;  %s750_s13 = smul.u32 6, %s1036_s19 }
  0x7f   : > { %v296_v13 = vadd.s32 40, %v1313_v3  ;;  %v297_v17 = vadd.s32 48, %v1313_v3  ;;  %v298_v18 = vadd.s32 56, %v1313_v3  ;;  %v299_v19 = vadd.s32 64, %v1313_v3  ;;  %s281_s26 = sld [smem:[#allocation9 + %s1032_s18]]  ;;  %s660_s14 = sshll.u32 %s1032_s18, 1 }
  0x80   : > { %v300_v20 = vadd.s32 72, %v1313_v3  ;;  %v301_v21 = vadd.s32 80, %v1313_v3  ;;  %v302_v22 = vadd.s32 88, %v1313_v3  ;;  %v303_v23 = vadd.s32 96, %v1313_v3  ;;  %s482_s10 = sadd.s32 %s750_s13, %s660_s14  ;;  %s470_s18 = scalar_lea.sflag [#allocation5], %s1293_s29 }
  0x81   : > { %v434_v6 = vstv %s1307_s24  ;;  %s286_s23 = ssub.s32 8, %s1307_s24  ;;  %v304_v24 = vadd.s32 104, %v1313_v3  ;;  %v305_v25 = vadd.s32 112, %v1313_v3  ;;  %v306_v26 = vadd.s32 120, %v1313_v3  ;;  %s661_s25 = sshll.u32 %s482_s10, 7 }
  0x82   : > { %v309_v8 = vstv %s1310_s27  ;;  %vm1327_vm0 = vcmp.ge.s32.totalorder %v1318_v5, %v434_v6  ;;  %s1338_s7 = scalar_lea.vmem [#allocation2], %s286_s23  ;;  %v459_v31 = vstv %s280_s12  ;;  %s1391_s19 = scalar_lea.hbm %s1455_s4, %s661_s25 }
  0x83   : > { %v310_v11 = vsub.s32 %v1315_v4, %v309_v8  ;;  %s437_s2 = sadd.s32 %s277_s20, %s1307_s24  ;;  %v288_v14 = vld [vmem:[%s1338_s7] sm:$0xff]  ;;  %v289_v27 = vld [vmem:[%s1338_s7 + $0x8] sm:$0xff]  ;;  %s271_s24 = scalar_lea.vmem [#allocation12], %s624_s6 }
  0x84   : > { %v1341_v15 = vstv %s437_s2  ;;  %714 = vmatprep.mubr.f32.mxu0 %v288_v14  ;;  %s452_s11 = sadd.s32 %s279_s8, %s1310_s27  ;;  %s485_s1 = sshll.u32 %s271_s24, 4  ;;  %s1393_s1 = int_to_ptr.vmem [resolvable:$true] %s485_s1 }
  0x85   : > { %vm311_vm1 = vcmp.eq.s32.totalorder %v1313_v3, %v310_v11  ;;  %vm312_vm2 = vcmp.eq.s32.totalorder %v1318_v5, %v310_v11  ;;  %vm440_vm3 = vcmp.lt.s32.totalorder %v1318_v5, %v1341_v15  ;;  %vm313_vm4 = vcmp.eq.s32.totalorder %v293_v7, %v310_v11  ;;  %s938_s6 = scalar_lea.vmem %s1393_s1, 256  ;;  %p1489_p2 = scmp.ne.s32.totalorder %s1477_s30, 0 }
  0x86   : > { %vm717_vm5 = vmpackc.low %vm312_vm2, %vm311_vm1  ;;  %vm314_vm6 = vcmp.eq.s32.totalorder %v294_v10, %v310_v11  ;;  %vm315_vm8 = vcmp.eq.s32.totalorder %v295_v12, %v310_v11  ;;  %vm316_vm9 = vcmp.eq.s32.totalorder %v296_v13, %v310_v11  ;;  %vm317_vm11 = vcmp.eq.s32.totalorder %v297_v17, %v310_v11  ;;  %p939_p0 = scmp.ne.s32.totalorder %s1393_s1, %s938_s6  ;;  %s1057_s20 = smov [#allocation12]  }
  0x87   : > { %718 = vmatprep.subr.msk.bf16.mxu0 %vm717_vm5, %v1056_v16  ;;  %vm721_vm7 = vmpackc.low %vm314_vm6, %vm313_vm4  ;;  %vm318_vm12 = vcmp.eq.s32.totalorder %v298_v18, %v310_v11  ;;  %vm319_vm14 = vcmp.eq.s32.totalorder %v299_v19, %v310_v11  ;;  %vm320_vm15 = vcmp.eq.s32.totalorder %v300_v20, %v310_v11  ;;  %vm321_vm2 = vcmp.eq.s32.totalorder %v301_v21, %v310_v11  ;;  %s942_s23 = sshll.u32 %s1057_s20, 4  ;;  %s943_s23 = int_to_ptr.vmem [resolvable:$false] %s942_s23 }
  0x88   : > { %720 = vmatpush3.bf16.msk.msra.mxu0 %vm717_vm5, %v1056_v16  ;;  %vm725_vm10 = vmpackc.low %vm316_vm9, %vm315_vm8  ;;  %vm322_vm4 = vcmp.eq.s32.totalorder %v302_v22, %v310_v11  ;;  %vm323_vm6 = vcmp.eq.s32.totalorder %v303_v23, %v310_v11  ;;  %vm325_vm9 = vcmp.eq.s32.totalorder %v305_v25, %v310_v11  ;;  %v453_v28 = vstv %s452_s11  ;;  %p940_p4 = pnand %p939_p0, %p1489_p2  ;;  %s944_s2 = scalar_lea.vmem %s943_s23, 512 }
  0x89   : > { %722 = vmatprep.subr.msk.bf16.mxu0 %vm721_vm7, %v1056_v16  ;;  %vm729_vm13 = vmpackc.low %vm318_vm12, %vm317_vm11  ;;  %v462_v33 = vstv %s281_s26  ;;  %p945_p10 = scmp.lt.s32.totalorder %s1393_s1, %s943_s23  ;;  %p946_p3 = scmp.lt.s32.totalorder %s944_s2, %s938_s6 }
  0x8a   : > { %vm733_vm1 = vmpackc.low %vm320_vm15, %vm319_vm14  ;;  %vm454_vm15 = vcmp.lt.s32.totalorder %v1315_v4, %v453_v28  ;;  %p941_p13 = pneg %p940_p4 }
  0x8b   : > { %vm737_vm5 = vmpackc.low %vm322_vm4, %vm321_vm2  ;;  %vm439_vm2 = vcmp.lt.s32.totalorder %v1313_v3, %v1341_v15  ;;  %p947_p5 = por %p946_p3, %p945_p10 }
  0x8c   : > { %724 = vmatpush3.bf16.msk.msra.mxu0 %vm721_vm7, %v1056_v16  ;;  %vm324_vm7 = vcmp.eq.s32.totalorder %v304_v24, %v310_v11  ;;  %vm442_vm12 = vmand %vm1327_vm0, %vm440_vm3 }
  0x8d   : > { %726 = vmatprep.subr.msk.bf16.mxu0 %vm725_vm10, %v1056_v16  ;;  %vm741_vm8 = vmpackc.low %vm324_vm7, %vm323_vm6  ;;  %p948_p7 = pnand %p947_p5, %p941_p13 }
  0x90   : > { %728 = vmatpush3.bf16.msk.msra.mxu0 %vm725_vm10, %v1056_v16  ;;  %vm326_vm10 = vcmp.eq.s32.totalorder %v306_v26, %v310_v11 }
  0x91   : > { %730 = vmatprep.subr.msk.bf16.mxu0 %vm729_vm13, %v1056_v16  ;;  %vm745_vm11 = vmpackc.low %vm326_vm10, %vm325_vm9 }
  0x94   : > { %732 = vmatpush3.bf16.msk.msra.mxu0 %vm729_vm13, %v1056_v16  ;;  %vm443_vm13 = vcmp.ge.s32.totalorder %v1315_v4, %v309_v8 }
  0x95   : > { %734 = vmatprep.subr.msk.bf16.mxu0 %vm733_vm1, %v1056_v16  ;;  %vm451_vm14 = vmand %vm442_vm12, %vm443_vm13 }
  0x96   : > { %vm1374_vm4 = vmand %vm451_vm14, %vm454_vm15 }
  0x98   : > { %736 = vmatpush3.bf16.msk.msra.mxu0 %vm733_vm1, %v1056_v16  ;;  %vm435_vm1 = vcmp.ge.s32.totalorder %v1313_v3, %v434_v6 }
  0x99   : > { %738 = vmatprep.subr.msk.bf16.mxu0 %vm737_vm5, %v1056_v16  ;;  %vm441_vm0 = vmand %vm435_vm1, %vm439_vm2 }
  0x9a   : > { %vm450_vm3 = vmand %vm441_vm0, %vm443_vm13 }
  0x9c   : > { %740 = vmatpush3.bf16.msk.msra.mxu0 %vm737_vm5, %v1056_v16  ;;  %vm1378_vm5 = vmand %vm450_vm3, %vm454_vm15 }
  0x9d   : > { %742 = vmatprep.subr.msk.bf16.mxu0 %vm741_vm8, %v1056_v16 }
  0xa0   : > { %744 = vmatpush3.bf16.msk.msra.mxu0 %vm741_vm8, %v1056_v16 }
  0xa1   : > { %746 = vmatprep.subr.msk.bf16.mxu0 %vm745_vm11, %v1056_v16 }
  0xa4   : > { %748 = vmatpush3.bf16.msk.msra.mxu0 %vm745_vm11, %v1056_v16 }
  0xa7   : > { %715 = vmatmul.mubr.f32.vlgmr.msra.gmra.mrb[0].mxu0 %v289_v27 }
 0x17a   : > { %v716_v32 = vpop.f32.mrb[0].mxu0 }
 0x17b   : > { %v461_v34 = vmul.f32 %v716_v32, %v459_v31  ;;  %v425_v35 = vpop.f32.mrb[1].mxu0 }
 0x17c   : > { %v460_v36 = vmul.f32 %v459_v31, %v425_v35 }
 0x17d   : > { %v464_v37 = vadd.f32 %v462_v33, %v461_v34 }
 0x17e   : > { %v463_v38 = vadd.f32 %v462_v33, %v460_v36 }
 0x17f   : > { %v466_v39 = vsel %vm1374_vm4, %v464_v37, %v462_v33 }
 0x180   : > { %468 = vst [vmem:[%s271_s24 + $0x8] sm:$0xff] %v466_v39  ;;  %v465_v40 = vsel %vm1378_vm5, %v463_v38, %v462_v33 }
 0x181   : > { %467 = vst [vmem:[%s271_s24] sm:$0xff] %v465_v40 }
 0x182   : > { %951 = shalt.err (!%p948_p7)
}
 0x183   : > { %s952_s7 = scalar_lea.hbm %s1391_s19, 256  ;;  %s956_s11 = scalar_lea.hbm %s1455_s4, 1536 }
 0x184   : > { %p953_p6 = scmp.ne.s32.totalorder %s1391_s19, %s952_s7  ;;  %p957_p11 = scmp.lt.u32.totalorder %s1391_s19, %s1455_s4 }
 0x185   : > { %p958_p9 = scmp.lt.u32.totalorder %s956_s11, %s952_s7  ;;  %p960_p0 = scmp.lt.u32.totalorder %s952_s7, %s1391_s19 }
 0x186   : > { %p954_p1 = pnand %p953_p6, %p1489_p2 }
 0x187   : > { %p959_p8 = por %p958_p9, %p957_p11 }
 0x188   : > { %p955_p12 = pneg %p954_p1 }
 0x189   : > { %p961_p4 = por %p960_p0, %p959_p8 }
 0x18b   : > { %p962_p13 = pnand %p961_p4, %p955_p12 }
 0x18d   : > { %965 = shalt.err (!%p962_p13)
}
 0x18e   : > { %s1058_s13 = smov 128   ;;  %s1059_s14 = smov 8  }
 0x18f   : > { %765 = dma.vmem_to_hbm [thread:$0]  (%p1489_p2), %s1393_s1, 256, %s1391_s19, %s470_s18, %s1058_s13, %s1058_s13, %s1059_s14  }
 0x190 PF: > { %p792_p10 = scmp.ge.s32.totalorder %s1048_s22, 2  ;;  %s500_s10 = sand.u32 1, %s1020_s15  }
 0x191   : > { %p1490_p3 = scmp.ne.s32.totalorder %s1470_s28, 0  ;;  %s501_s25 = scalar_lea.sflag [#allocation5], %s500_s10 }
 0x193   : > { %p782_p5 = pnand %p792_p10, %p1490_p3 }
 0x195   : > { %1015 = dma.done.wait (!%p782_p5), %s501_s25, 256  }
 0x196   : > { %1017 = vsyncadd (!%p782_p5), %s501_s25, 4294967040  ;;  %s23_s22 = sadd.s32 1, %s1048_s22   ;;  %s1491_s18 = sld [smem:[#allocation18_spill]] }
 0x197   : > { %p20_p7 = scmp.ge.s32.totalorder %s23_s22, 8   ;;  %s1492_s20 = sld [smem:[#allocation19_spill]] }
 0x198   : > { %s1493_s30 = sld [smem:[#allocation20_spill]]  ;;  %s1494_s15 = smov %s1024_s16 }
 0x199   : > { %s1495_s16 = smov %s1028_s17  ;;  %s1496_s17 = smov %s1233_s0 }
 0x19a   : > { %s1497_s19 = smov %s1044_s21  ;;  %22 = sbr.rel (!%p20_p7) target bundleno = 14 (0xe), region = 96 }
 0x19e   : > { %s1498_s21 = smov %s1493_s30 }
 0x1a1   :  { %506 = vsyncpa [#allocation4], 1 }
 0x1a2   :  { %508 = vsyncpa [#allocation4 + $0x1], 1 }
 0x1a3   :  { %509 = vsyncpa [#allocation5], 1 }
 0x1a4   :  { %511 = vsyncpa [#allocation5 + $0x1], 1 }
 0x1a5   :  { %512 = vsyncpa [#allocation6], 1 }
 0x1a6   :  { %514 = vsyncpa [#allocation6 + $0x1], 1 }
 0x1a7   :  { %515 = vsyncpa [#allocation7], 1 }
 0x1a8   :  { %517 = vsyncpa [#allocation7 + $0x1], 1 }
 0x1a9   :  { %518 = vsyncpa [#allocation10], 1 }

</bundles_post_ra>
